<compile_context>
chip_gen: v7x
topology: tpu7x:2x2x1
jax: 0.10.0
libtpu: 0.0.40
codegen_flags: <defaults>
</compile_context>

<pallas_src>
import math

import jax
import jax.numpy as jnp
from jax.experimental import pallas as pl
from jax.experimental.pallas import tpu as pltpu


# -----------------------------------------------------------------------------
# Kernels
# -----------------------------------------------------------------------------
def _train_tiled_kernel(x_ref, xs_ref, wmu_ref, wsig_ref, eps_j_ref, bias_ref,
                        o_ref, acc_mu_ref, acc_sig_ref):
    """One (i, j, k) grid step of  y = x @ Wmu + ((x*eps_i) @ Wsig)*eps_j + b."""
    k = pl.program_id(2)

    @pl.when(k == 0)
    def _init():
        acc_mu_ref[...] = jnp.zeros_like(acc_mu_ref)
        acc_sig_ref[...] = jnp.zeros_like(acc_sig_ref)

    wdt = wmu_ref.dtype                      # bf16 weights -> bf16 MXU inputs
    acc_mu_ref[...] += jnp.dot(x_ref[...].astype(wdt), wmu_ref[...],
                               preferred_element_type=jnp.float32)
    acc_sig_ref[...] += jnp.dot(xs_ref[...].astype(wdt), wsig_ref[...],
                                preferred_element_type=jnp.float32)

    @pl.when(k == pl.num_programs(2) - 1)
    def _finalize():
        # eps_j scaling and bias add are hoisted out of the K loop.
        o_ref[...] = (acc_mu_ref[...]
                      + acc_sig_ref[...] * eps_j_ref[...]
                      + bias_ref[...]).astype(o_ref.dtype)


def _eval_tiled_kernel(x_ref, wmu_ref, bias_ref, o_ref, acc_ref):
    k = pl.program_id(2)

    @pl.when(k == 0)
    def _init():
        acc_ref[...] = jnp.zeros_like(acc_ref)

    acc_ref[...] += jnp.dot(x_ref[...].astype(wmu_ref.dtype), wmu_ref[...],
                            preferred_element_type=jnp.float32)

    @pl.when(k == pl.num_programs(2) - 1)
    def _finalize():
        o_ref[...] = (acc_ref[...] + bias_ref[...]).astype(o_ref.dtype)


def _train_single_kernel(x_ref, xs_ref, wmu_ref, wsig_ref, eps_j_ref, bias_ref,
                         o_ref):
    """Whole problem in one VMEM block (tiny layers)."""
    wdt = wmu_ref.dtype
    acc = jnp.dot(x_ref[...].astype(wdt), wmu_ref[...],
                  preferred_element_type=jnp.float32)
    acc += jnp.dot(xs_ref[...].astype(wdt), wsig_ref[...],
                   preferred_element_type=jnp.float32) * eps_j_ref[...]
    o_ref[...] = (acc + bias_ref[...]).astype(o_ref.dtype)


def _eval_single_kernel(x_ref, wmu_ref, bias_ref, o_ref):
    acc = jnp.dot(x_ref[...].astype(wmu_ref.dtype), wmu_ref[...],
                  preferred_element_type=jnp.float32)
    o_ref[...] = (acc + bias_ref[...]).astype(o_ref.dtype)


# -----------------------------------------------------------------------------
# Tiling helpers
# -----------------------------------------------------------------------------
def _round_up(a, b):
    return ((a + b - 1) // b) * b


def _pick_tile(padded, unit, max_tile):
    """Largest multiple of `unit` that divides `padded` and is <= max_tile.

    Prefers multiples of 256 (v6e/v7x MXU width) when one divides evenly; a
    dimension that already fits in one tile is taken whole (no degradation to
    128-wide K tiles for shapes like K=640)."""
    if padded <= max_tile:
        return padded
    cap = max_tile - (max_tile % unit)
    for pref in (256, unit):
        if pref % unit != 0 or pref > cap:
            continue
        t = cap - (cap % pref)
        while t >= pref:
            if padded % t == 0:
                return t
            t -= pref
    return unit


# -----------------------------------------------------------------------------
# Forward wrapper
# -----------------------------------------------------------------------------
def noisy_layer_forward(x, params, *, training=True,
                        tile_m=128, tile_n=512, tile_k=1024,
                        weight_buffers=2):
    """Pallas forward of NoisyLayer.forward.

    x:      (batch, in_features) float32.
    params: dict from init_noisy_layer / set_noise (weights stored transposed,
            128-padded, bf16; noise kept in rank-1 factored form).
    """
    batch, in_features = x.shape
    assert in_features == params["in_features"], "in_features mismatch"
    out_features = params["out_features"]

    wmu_p = params["wmu_p"]
    kp, np_ = wmu_p.shape

    mp = _round_up(batch, 8)
    # Only the small per-call activation is padded here; the big weight
    # matrices were padded once at init time.
    x_p = jnp.pad(x, ((0, mp - batch), (0, kp - in_features)))

    if training:
        # Fold the bias once (O(out_features)) and pre-scale x by eps_i once
        # (O(batch*in)); both are trivial next to the weight streams.
        bias_p = params["bias_mu_p"] + params["bias_sig_p"] * params["bias_eps_p"]
        xs_p = x_p * params["eps_i_p"]
    else:
        bias_p = params["bias_mu_p"]

    out_shape = jax.ShapeDtypeStruct((mp, np_), x.dtype)

    # ---- single-block fast path: tiny layers (e.g. LunarLander 8x32x32) ----
    if mp <= tile_m and np_ <= tile_n and kp <= tile_k:
        if training:
            y_p = pl.pallas_call(_train_single_kernel, out_shape=out_shape)(
                x_p, xs_p, wmu_p, params["wsig_p"], params["eps_j_p"], bias_p)
        else:
            y_p = pl.pallas_call(_eval_single_kernel, out_shape=out_shape)(
                x_p, wmu_p, bias_p)
        return y_p[:batch, :out_features]

    # ---- tiled, pipelined (M, N, K) path -----------------------------------
    tm = _pick_tile(mp, 8, tile_m)
    tn = _pick_tile(np_, 128, tile_n)
    tk = _pick_tile(kp, 128, tile_k)

    # v7x has 2 TensorCores: make sure a "parallel" grid axis has >= 2 blocks.
    if (mp // tm) * (np_ // tn) == 1:
        if np_ >= 256:
            tn = _pick_tile(np_, 128, np_ // 2)
        elif mp >= 16:
            tm = _pick_tile(mp, 8, mp // 2)

    grid = (mp // tm, np_ // tn, kp // tk)

    x_spec = pl.BlockSpec((tm, tk), lambda i, j, k: (i, k))
    w_kwargs = {}
    if weight_buffers != 2:   # optional deeper buffering for tiny-compute steps
        w_kwargs["pipeline_mode"] = pl.Buffered(weight_buffers)
    w_spec = pl.BlockSpec((tk, tn), lambda i, j, k: (k, j), **w_kwargs)
    nvec_spec = pl.BlockSpec((1, tn), lambda i, j, k: (0, j))
    out_spec = pl.BlockSpec((tm, tn), lambda i, j, k: (i, j))

    cparams = pltpu.CompilerParams(
        dimension_semantics=("parallel", "parallel", "arbitrary"),
        # Default tiles use ~7 MiB double-buffered; 32 MiB is safe on v5e
        # (128 MiB physical), v6e (128 MiB) and v7x (64 MiB physical).
        vmem_limit_bytes=32 * 1024 * 1024,
    )

    if training:
        y_p = pl.pallas_call(
            _train_tiled_kernel,
            out_shape=out_shape,
            grid_spec=pltpu.PrefetchScalarGridSpec(
                num_scalar_prefetch=0,
                grid=grid,
                in_specs=[x_spec, x_spec, w_spec, w_spec, nvec_spec, nvec_spec],
                out_specs=out_spec,
                scratch_shapes=[pltpu.VMEM((tm, tn), jnp.float32),
                                pltpu.VMEM((tm, tn), jnp.float32)]),
            compiler_params=cparams,
        )(x_p, xs_p, wmu_p, params["wsig_p"], params["eps_j_p"], bias_p)
    else:
        y_p = pl.pallas_call(
            _eval_tiled_kernel,
            out_shape=out_shape,
            grid_spec=pltpu.PrefetchScalarGridSpec(
                num_scalar_prefetch=0,
                grid=grid,
                in_specs=[x_spec, w_spec, nvec_spec],
                out_specs=out_spec,
                scratch_shapes=[pltpu.VMEM((tm, tn), jnp.float32)]),
            compiler_params=cparams,
        )(x_p, wmu_p, bias_p)

    return y_p[:batch, :out_features]


# -----------------------------------------------------------------------------
# Parameter init / noise, mirroring NoisyLayer.__init__ / reset_parameters /
# set_noise (RNG streams come from jax.random instead of torch).
# -----------------------------------------------------------------------------
def _f_factorised(key, size):
    """f(x) = sign(x) * sqrt(|x|) applied to standard normal noise."""
    v = jax.random.normal(key, (size,), dtype=jnp.float32)
    return jnp.sign(v) * jnp.sqrt(jnp.abs(v))


def set_noise(key, params):
    """Fresh factorised Gaussian noise, kept rank-1 (weights_eps never built).
    bias_eps is an independent draw, exactly as in the module's set_noise()."""
    in_f, out_f = params["in_features"], params["out_features"]
    kp, np_ = params["wmu_p"].shape
    k_i, k_j, k_b = jax.random.split(key, 3)
    new = dict(params)
    new["eps_i_p"] = jnp.pad(_f_factorised(k_i, in_f), (0, kp - in_f)).reshape(1, kp)
    new["eps_j_p"] = jnp.pad(_f_factorised(k_j, out_f), (0, np_ - out_f)).reshape(1, np_)
    new["bias_eps_p"] = jnp.pad(_f_factorised(k_b, out_f), (0, np_ - out_f)).reshape(1, np_)
    return new


def init_noisy_layer(key, in_features, out_features, var_init=0.5,
                     weight_dtype=jnp.bfloat16):
    """Weights stored transposed (in, out), zero-padded ONCE to multiples of
    128 and cast to `weight_dtype` (bf16 default: halves weight HBM traffic and
    uses the MXU's native bf16 rate; in-kernel accumulation stays f32)."""
    k_wmu, k_bmu, k_noise = jax.random.split(key, 3)
    bound = 1.0 / math.sqrt(in_features)
    sig_val = var_init / math.sqrt(in_features)

    kp = _round_up(in_features, 128)
    np_ = _round_up(out_features, 128)

    def pad2(a):
        return jnp.pad(a, ((0, kp - a.shape[0]), (0, np_ - a.shape[1])))

    def padn(v):
        return jnp.pad(v, (0, np_ - v.shape[0])).reshape(1, np_)

    weights_mu_t = jax.random.uniform(k_wmu, (in_features, out_features),
                                      minval=-bound, maxval=bound,
                                      dtype=jnp.float32)
    weights_sig_t = jnp.full((in_features, out_features), sig_val, jnp.float32)
    bias_mu = jax.random.uniform(k_bmu, (out_features,), minval=-bound,
                                 maxval=bound, dtype=jnp.float32)
    bias_sig = jnp.full((out_features,), sig_val, jnp.float32)

    params = {
        "in_features": in_features,
        "out_features": out_features,
        "wmu_p": pad2(weights_mu_t).astype(weight_dtype),
        "wsig_p": pad2(weights_sig_t).astype(weight_dtype),
        "bias_mu_p": padn(bias_mu),
        "bias_sig_p": padn(bias_sig),
    }
    return set_noise(k_noise, params)


# -----------------------------------------------------------------------------
# References
# -----------------------------------------------------------------------------
def _ref_forward(x, params, training):
    """Reference using the stored (possibly bf16) weights; mirrors the kernel's
    factored rank-1 noise math with the same input precision."""
    in_f, out_f = x.shape[1], params["out_features"]
    wdt = params["wmu_p"].dtype
    cast = lambda v: v.astype(wdt).astype(jnp.float32)
    w_mu = params["wmu_p"][:in_f, :out_f].astype(jnp.float32)
    bias = params["bias_mu_p"][0, :out_f]
    if not training:
        return cast(x) @ w_mu + bias
    w_sig = params["wsig_p"][:in_f, :out_f].astype(jnp.float32)
    eps_i = params["eps_i_p"][0, :in_f]
    eps_j = params["eps_j_p"][0, :out_f]
    bias = bias + params["bias_sig_p"][0, :out_f] * params["bias_eps_p"][0, :out_f]
    return (cast(x) @ w_mu
            + (cast(x * eps_i[None, :]) @ w_sig) * eps_j[None, :]
            + bias)


def _ref_forward_module(x, params, training):
    """Direct transcription of the PyTorch forward (materializes the full
    weights_eps = outer(eps_j, eps_i); weights here must be f32)."""
    in_f, out_f = x.shape[1], params["out_features"]
    w = params["wmu_p"][:in_f, :out_f].astype(jnp.float32)
    b = params["bias_mu_p"][0, :out_f]
    if training:
        eps = (params["eps_i_p"][0, :in_f, None]
               * params["eps_j_p"][0, None, :out_f])
        w = w + params["wsig_p"][:in_f, :out_f].astype(jnp.float32) * eps
        b = b + params["bias_sig_p"][0, :out_f] * params["bias_eps_p"][0, :out_f]
    return x @ w + b


# -----------------------------------------------------------------------------
# Demo / checks
# -----------------------------------------------------------------------------
if __name__ == "__main__":
    key = jax.random.PRNGKey(0)
    k1, k2, k3, k4, k5, k6, k7 = jax.random.split(key, 7)

    # 1) LunarLander-sized layer (hidden=32): single-block fast path, f32
    #    weights so we can check against the exact module math.
    batch, in_f, out_f = 8, 32, 32
    p_small = init_noisy_layer(k1, in_f, out_f, var_init=0.5,
                               weight_dtype=jnp.float32)
    x = jax.random.normal(k2, (batch, in_f), dtype=jnp.float32)

    y_tr = jax.block_until_ready(noisy_layer_forward(x, p_small, training=True))
    y_ev = jax.block_until_ready(noisy_layer_forward(x, p_small, training=False))
    assert y_tr.shape == (batch, out_f)
    assert jnp.allclose(y_tr, _ref_forward_module(x, p_small, True),
                        atol=1e-5, rtol=1e-5)
    assert jnp.allclose(y_ev, _ref_forward_module(x, p_small, False),
                        atol=1e-5, rtol=1e-5)

    # 2) bf16-weight layer exercising the tiled (M, N, K) grid, the pl.when
    #    init/accumulate/finalize path and >=2 parallel blocks.
    b2, in2, out2 = 96, 768, 512
    p_mid = init_noisy_layer(k3, in2, out2)
    x2 = jax.random.normal(k4, (b2, in2), dtype=jnp.float32)

    # Forced small tiles -> grid (2, 2, 3).
    y2 = jax.block_until_ready(noisy_layer_forward(
        x2, p_mid, training=True, tile_m=64, tile_n=256, tile_k=256))
    assert jnp.allclose(y2, _ref_forward(x2, p_mid, True), atol=2e-3, rtol=2e-3)

    # Default tiles -> whole problem fits one block (fast path); same result.
    y2_fast = jax.block_until_ready(noisy_layer_forward(x2, p_mid, training=True))
    assert jnp.allclose(y2_fast, _ref_forward(x2, p_mid, True), atol=2e-3, rtol=2e-3)

    # Fresh noise via set_noise() (rank-1 update; weights untouched in HBM).
    p_mid = set_noise(k5, p_mid)
    y2n = jax.block_until_ready(noisy_layer_forward(
        x2, p_mid, training=True, tile_m=64, tile_n=256, tile_k=256))
    assert jnp.allclose(y2n, _ref_forward(x2, p_mid, True), atol=2e-3, rtol=2e-3)

    # 3) Larger layer on the DEFAULT tiled config: tm=128, tn=512, tk=1024,
    #    grid (2, 2, 2), bf16 weight streaming, f32 accumulators.
    b3, in3, out3 = 256, 2048, 1024
    p_big = init_noisy_layer(k6, in3, out3)
    x3 = jax.random.normal(k7, (b3, in3), dtype=jnp.float32)
    y3 = jax.block_until_ready(noisy_layer_forward(x3, p_big, training=True))
    y3e = jax.block_until_ready(noisy_layer_forward(x3, p_big, training=False))
    assert jnp.allclose(y3, _ref_forward(x3, p_big, True), atol=2e-3, rtol=2e-3)
    assert jnp.allclose(y3e, _ref_forward(x3, p_big, False), atol=2e-3, rtol=2e-3)

    print("KERNEL_OK")
</pallas_src>

<mosaic_0001>
module attributes {stable_mosaic.version = 11 : i64} {
  func.func @_train_single_kernel(%arg0: memref<8x128xf32, #tpu.memory_space<vmem>>, %arg1: memref<8x128xf32, #tpu.memory_space<vmem>>, %arg2: memref<128x128xf32, #tpu.memory_space<vmem>>, %arg3: memref<128x128xf32, #tpu.memory_space<vmem>>, %arg4: memref<1x128xf32, #tpu.memory_space<vmem>>, %arg5: memref<1x128xf32, #tpu.memory_space<vmem>>, %arg6: memref<8x128xf32, #tpu.memory_space<vmem>>) attributes {dimension_semantics = [], scalar_prefetch = 0 : i64, scratch_operands = 0 : i64, tpu.core_type = #tpu.core_type<tc>} {
    %c0 = arith.constant 0 : index
    %c0_0 = arith.constant 0 : index
    %0 = vector.load %arg0[%c0, %c0_0] : memref<8x128xf32, #tpu.memory_space<vmem>>, vector<8x128xf32>
    %c0_1 = arith.constant 0 : index
    %c0_2 = arith.constant 0 : index
    %1 = vector.load %arg2[%c0_1, %c0_2] : memref<128x128xf32, #tpu.memory_space<vmem>>, vector<128x128xf32>
    %cst = arith.constant dense<0.000000e+00> : vector<8x128xf32>
    %2 = tpu.matmul %0, %1, %cst {dimension_numbers = #tpu.dot_dimension_numbers<[1], [0], [0], [1], [0, 0, 1, 1], [], []>} : vector<8x128xf32>, vector<128x128xf32>, vector<8x128xf32> -> vector<8x128xf32>
    %c0_3 = arith.constant 0 : index
    %c0_4 = arith.constant 0 : index
    %3 = vector.load %arg1[%c0_3, %c0_4] : memref<8x128xf32, #tpu.memory_space<vmem>>, vector<8x128xf32>
    %c0_5 = arith.constant 0 : index
    %c0_6 = arith.constant 0 : index
    %4 = vector.load %arg3[%c0_5, %c0_6] : memref<128x128xf32, #tpu.memory_space<vmem>>, vector<128x128xf32>
    %cst_7 = arith.constant dense<0.000000e+00> : vector<8x128xf32>
    %5 = tpu.matmul %3, %4, %cst_7 {dimension_numbers = #tpu.dot_dimension_numbers<[1], [0], [0], [1], [0, 0, 1, 1], [], []>} : vector<8x128xf32>, vector<128x128xf32>, vector<8x128xf32> -> vector<8x128xf32>
    %c0_8 = arith.constant 0 : index
    %c0_9 = arith.constant 0 : index
    %6 = vector.load %arg4[%c0_8, %c0_9] : memref<1x128xf32, #tpu.memory_space<vmem>>, vector<1x128xf32>
    %7 = vector.broadcast %6 : vector<1x128xf32> to vector<8x128xf32>
    %8 = arith.mulf %5, %7 : vector<8x128xf32>
    %9 = arith.addf %2, %8 : vector<8x128xf32>
    %c0_10 = arith.constant 0 : index
    %c0_11 = arith.constant 0 : index
    %10 = vector.load %arg5[%c0_10, %c0_11] : memref<1x128xf32, #tpu.memory_space<vmem>>, vector<1x128xf32>
    %11 = vector.broadcast %10 : vector<1x128xf32> to vector<8x128xf32>
    %12 = arith.addf %9, %11 : vector<8x128xf32>
    %c0_12 = arith.constant 0 : index
    %c0_13 = arith.constant 0 : index
    %13 = vector.load %arg6[%c0_12, %c0_13] : memref<8x128xf32, #tpu.memory_space<vmem>>, vector<8x128xf32>
    tpu.vector_store %arg6[%c0_12, %c0_13], %12 {strides = array<i32>} : memref<8x128xf32, #tpu.memory_space<vmem>>, vector<8x128xf32>,
    return
  }
}

</mosaic_0001>

<bundles_post_ra>
// kernel: tpu_custom_call.1
= control target key start
LH: loop header
LB: loop body
LE: loop exit
PB: predicated region body
PF: predicated region fallthrough
CT: control target
= control target key end

     0   :  { %11 = vsyncpa [#allocation3], 0  ;;  %s692_s0 = inlined_call_operand.hbm [shape: f32[8,128], index: 0, kind: input, shape index: {}]   ;;  %s693_s1 = inlined_call_operand.hbm [shape: f32[8,128], index: 1, kind: input, shape index: {}]   ;;  %s694_s2 = inlined_call_operand.hbm [shape: f32[128,128], index: 2, kind: input, shape index: {}]   ;;  %s695_s3 = inlined_call_operand.hbm [shape: f32[128,128], index: 3, kind: input, shape index: {}]   ;;  %s696_s4 = inlined_call_operand.vmem [shape: f32[1,128], index: 4, kind: input, shape index: {}]   ;;  %s697_s5 = inlined_call_operand.vmem [shape: f32[1,128], index: 5, kind: input, shape index: {}]   ;;  %s698_s6 = inlined_call_operand.hbm [shape: f32[8,128], index: 6, kind: output, shape index: {}]  }
   0x1   :  { %12 = vsyncpa [#allocation6], 0 }
   0x2   :  { %13 = vsyncpa [#allocation9], 0 }
   0x3   :  { %14 = vsyncpa [#allocation4], 0  ;;  %s565_s21 = smov [#allocation5]   ;;  %s566_s23 = smov [#allocation2]  }
   0x4   :  { %s31_s22 = sshll.u32 %s565_s21, 4  ;;  %s21_s24 = sshll.u32 %s566_s23, 4  ;;  %s32_s22 = int_to_ptr.vmem [resolvable:$true] %s31_s22  ;;  %s22_s24 = int_to_ptr.vmem [resolvable:$true] %s21_s24 }
   0x5   :  { %s447_s27 = scalar_lea.hbm %s693_s1, 128 }
   0x6   :  { %p448_p0 = scmp.ne.s32.totalorder %s693_s1, %s447_s27  ;;  %p451_p1 = scmp.lt.u32.totalorder %s447_s27, %s693_s1 }
   0x8   :  { %p453_p2 = pnand %p451_p1, %p448_p0 }
   0xa   :  { %456 = shalt.err (!%p453_p2)
}
   0xb   :  { %s457_s8 = scalar_lea.vmem %s32_s22, 128  ;;  %p462_p4 = scmp.lt.s32.totalorder %s32_s22, %s32_s22 }
   0xc   :  { %p458_p3 = scmp.ne.s32.totalorder %s32_s22, %s457_s8  ;;  %p463_p5 = scmp.lt.s32.totalorder %s457_s8, %s457_s8 }
   0xe   :  { %p464_p6 = por %p463_p5, %p462_p4 }
  0x10   :  { %p465_p7 = pnand %p464_p6, %p458_p3 }
  0x12   :  { %468 = shalt.err (!%p465_p7)
}
  0x13   :  { %34 = dma.hbm_to_vmem [thread:$0]  %s693_s1, 128, %s32_s22, [#allocation6]  }
  0x14   :  { %s469_s13 = scalar_lea.hbm %s692_s0, 128 }
  0x15   :  { %p470_p8 = scmp.ne.s32.totalorder %s692_s0, %s469_s13  ;;  %p473_p9 = scmp.lt.u32.totalorder %s469_s13, %s692_s0 }
  0x17   :  { %p475_p10 = pnand %p473_p9, %p470_p8 }
  0x19   :  { %478 = shalt.err (!%p475_p10)
}
  0x1a   :  { %s479_s18 = scalar_lea.vmem %s22_s24, 128  ;;  %p484_p12 = scmp.lt.s32.totalorder %s22_s24, %s22_s24 }
  0x1b   :  { %p480_p11 = scmp.ne.s32.totalorder %s22_s24, %s479_s18  ;;  %p485_p13 = scmp.lt.s32.totalorder %s479_s18, %s479_s18 }
  0x1d   :  { %p486_p0 = por %p485_p13, %p484_p12 }
  0x1f   :  { %p487_p1 = pnand %p486_p0, %p480_p11 }
  0x21   :  { %490 = shalt.err (!%p487_p1)
}
  0x22   :  { %24 = dma.hbm_to_vmem [thread:$0]  %s692_s0, 128, %s22_s24, [#allocation3]  }
  0x23   :  { %s567_s20 = smov [#allocation7]   ;;  %s491_s25 = scalar_lea.hbm %s694_s2, 2048 }
  0x24   :  { %s40_s21 = sshll.u32 %s567_s20, 4  ;;  %p492_p2 = scmp.ne.s32.totalorder %s694_s2, %s491_s25  ;;  %s41_s21 = int_to_ptr.vmem [resolvable:$true] %s40_s21 }
  0x25   :  { %p495_p3 = scmp.lt.u32.totalorder %s491_s25, %s694_s2 }
  0x27   :  { %p497_p4 = pnand %p495_p3, %p492_p2 }
  0x29   :  { %500 = shalt.err (!%p497_p4)
}
  0x2a   :  { %s501_s30 = scalar_lea.vmem %s41_s21, 2048  ;;  %p506_p6 = scmp.lt.s32.totalorder %s41_s21, %s41_s21 }
  0x2b   :  { %p502_p5 = scmp.ne.s32.totalorder %s41_s21, %s501_s30  ;;  %p507_p7 = scmp.lt.s32.totalorder %s501_s30, %s501_s30 }
  0x2d   :  { %p508_p8 = por %p507_p7, %p506_p6 }
  0x2f   :  { %p509_p9 = pnand %p508_p8, %p502_p5 }
  0x31   :  { %512 = shalt.err (!%p509_p9)
}
  0x32   :  { %s568_s0 = smov 128   ;;  %s569_s24 = smov 8  }
  0x33   :  { %46 = dma.hbm_to_vmem [thread:$0]  %s694_s2, 2048, %s41_s21, [#allocation6], %s568_s0, %s568_s0, %s569_s24  }
  0x34   :  { %s570_s9 = smov [#allocation8]   ;;  %s513_s13 = scalar_lea.hbm %s695_s3, 2048 }
  0x35   :  { %s52_s10 = sshll.u32 %s570_s9, 4  ;;  %p514_p10 = scmp.ne.s32.totalorder %s695_s3, %s513_s13  ;;  %s53_s10 = int_to_ptr.vmem [resolvable:$true] %s52_s10 }
  0x36   :  { %p517_p11 = scmp.lt.u32.totalorder %s513_s13, %s695_s3 }
  0x38   :  { %p519_p12 = pnand %p517_p11, %p514_p10 }
  0x3a   :  { %522 = shalt.err (!%p519_p12)
}
  0x3b   :  { %s523_s18 = scalar_lea.vmem %s53_s10, 2048  ;;  %p528_p0 = scmp.lt.s32.totalorder %s53_s10, %s53_s10 }
  0x3c   :  { %p524_p13 = scmp.ne.s32.totalorder %s53_s10, %s523_s18  ;;  %p529_p1 = scmp.lt.s32.totalorder %s523_s18, %s523_s18 }
  0x3e   :  { %p530_p2 = por %p529_p1, %p528_p0 }
  0x40   :  { %p531_p3 = pnand %p530_p2, %p524_p13 }
  0x42   :  { %534 = shalt.err (!%p531_p3)
}
  0x43   :  { %58 = dma.hbm_to_vmem [thread:$0]  %s695_s3, 2048, %s53_s10, [#allocation9], %s568_s0, %s568_s0, %s569_s24  }
  0x44   :  { %557 = dma.done.wait [#allocation3], 128  }
  0x45   :  { %558 = vsyncadd [#allocation3], 4294967168 }
  0x46   :  { %559 = dma.done.wait [#allocation6], 2176  }
  0x47   :  { %560 = vsyncadd [#allocation6], 4294965120 }
  0x48   :  { %561 = dma.done.wait [#allocation9], 2048  }
  0x49   :  { %562 = vsyncadd [#allocation9], 4294965248  ;;  %v571_v0 = vmov 0.0|0.0   ;;  %vm572_vm0 = vmmov 0   ;;  %v573_v1 = vmov 0.0   ;;  %v93_v2 = vld [vmem:[#allocation8] sm:$0xff] }
  0x4a   :  { %389 = vmatprep.subr.bf16.mxu0 %v571_v0  ;;  %413 = vmatprep.subr.bf16.mxu1 %v571_v0  ;;  %v94_v3 = vld [vmem:[#allocation8 + $0x8] sm:$0xff]  ;;  %v76_v4 = vld [vmem:[#allocation7] sm:$0xff]  ;;  %v95_v7 = vld [vmem:[#allocation8 + $0x10] sm:$0xff]  ;;  %s574_s22 = smov [#allocation10]  }
  0x4b   :  { %351 = vmatprep.mubr.msk.f32.mxu0 %vm572_vm0, %v573_v1  ;;  %386 = vmatprep.mubr.msk.f32.mxu1 %vm572_vm0, %v573_v1  ;;  %v390_v5 = vpack.c.bf16 %v94_v3, %v93_v2  ;;  %v77_v6 = vld [vmem:[#allocation7 + $0x8] sm:$0xff]  ;;  %v96_v8 = vld [vmem:[#allocation8 + $0x18] sm:$0xff]  ;;  %v78_v10 = vld [vmem:[#allocation7 + $0x10] sm:$0xff]  ;;  %s272_s23 = sshll.u32 %s574_s22, 4  ;;  %s273_s23 = int_to_ptr.vmem [resolvable:$true] %s272_s23 }
  0x4c   :  { %v414_v9 = vpack.c.bf16 %v77_v6, %v76_v4  ;;  %v79_v11 = vld [vmem:[#allocation7 + $0x18] sm:$0xff]  ;;  %v393_v12 = vpack.c.bf16 %v96_v8, %v95_v7  ;;  %v97_v14 = vld [vmem:[#allocation8 + $0x20] sm:$0xff]  ;;  %v98_v15 = vld [vmem:[#allocation8 + $0x28] sm:$0xff]  ;;  %s535_s25 = scalar_lea.vmem %s273_s23, 128  ;;  %p540_p5 = scmp.lt.s32.totalorder %s273_s23, %s273_s23 }
  0x4d   :  { %391 = vmatpush3.bf16.msra.mxu0 %v390_v5  ;;  %v417_v13 = vpack.c.bf16 %v79_v11, %v78_v10  ;;  %v80_v16 = vld [vmem:[#allocation7 + $0x20] sm:$0xff]  ;;  %v81_v17 = vld [vmem:[#allocation7 + $0x28] sm:$0xff]  ;;  %v396_v18 = vpack.c.bf16 %v98_v15, %v97_v14  ;;  %v99_v20 = vld [vmem:[#allocation8 + $0x30] sm:$0xff]  ;;  %p536_p4 = scmp.ne.s32.totalorder %s273_s23, %s535_s25  ;;  %p541_p6 = scmp.lt.s32.totalorder %s535_s25, %s535_s25 }
  0x4e   :  { %415 = vmatpush3.bf16.msra.mxu1 %v414_v9  ;;  %392 = vmatprep.subr.bf16.mxu0 %v571_v0  ;;  %v420_v19 = vpack.c.bf16 %v81_v17, %v80_v16  ;;  %v100_v21 = vld [vmem:[#allocation8 + $0x38] sm:$0xff]  ;;  %v82_v22 = vld [vmem:[#allocation7 + $0x30] sm:$0xff]  ;;  %v101_v26 = vld [vmem:[#allocation8 + $0x40] sm:$0xff] }
  0x4f   :  { %416 = vmatprep.subr.bf16.mxu1 %v571_v0  ;;  %v83_v23 = vld [vmem:[#allocation7 + $0x38] sm:$0xff]  ;;  %v399_v24 = vpack.c.bf16 %v100_v21, %v99_v20  ;;  %v102_v27 = vld [vmem:[#allocation8 + $0x48] sm:$0xff]  ;;  %v84_v28 = vld [vmem:[#allocation7 + $0x40] sm:$0xff]  ;;  %p542_p7 = por %p541_p6, %p540_p5 }
  0x50   :  { %v423_v25 = vpack.c.bf16 %v83_v23, %v82_v22  ;;  %v85_v29 = vld [vmem:[#allocation7 + $0x48] sm:$0xff]  ;;  %v402_v30 = vpack.c.bf16 %v102_v27, %v101_v26  ;;  %v103_v32 = vld [vmem:[#allocation8 + $0x50] sm:$0xff]  ;;  %v104_v33 = vld [vmem:[#allocation8 + $0x58] sm:$0xff] }
  0x51   :  { %394 = vmatpush3.bf16.msra.mxu0 %v393_v12  ;;  %v426_v31 = vpack.c.bf16 %v85_v29, %v84_v28  ;;  %v86_v34 = vld [vmem:[#allocation7 + $0x50] sm:$0xff]  ;;  %v87_v35 = vld [vmem:[#allocation7 + $0x58] sm:$0xff]  ;;  %v405_v36 = vpack.c.bf16 %v104_v33, %v103_v32  ;;  %v105_v38 = vld [vmem:[#allocation8 + $0x60] sm:$0xff]  ;;  %p543_p8 = pnand %p542_p7, %p536_p4 }
  0x52   :  { %418 = vmatpush3.bf16.msra.mxu1 %v417_v13  ;;  %395 = vmatprep.subr.bf16.mxu0 %v571_v0  ;;  %v429_v37 = vpack.c.bf16 %v87_v35, %v86_v34  ;;  %v106_v39 = vld [vmem:[#allocation8 + $0x68] sm:$0xff]  ;;  %v88_v40 = vld [vmem:[#allocation7 + $0x60] sm:$0xff]  ;;  %v107_v44 = vld [vmem:[#allocation8 + $0x70] sm:$0xff] }
  0x53   :  { %419 = vmatprep.subr.bf16.mxu1 %v571_v0  ;;  %v89_v41 = vld [vmem:[#allocation7 + $0x68] sm:$0xff]  ;;  %v408_v42 = vpack.c.bf16 %v106_v39, %v105_v38  ;;  %v108_v45 = vld [vmem:[#allocation8 + $0x78] sm:$0xff]  ;;  %v90_v46 = vld [vmem:[#allocation7 + $0x70] sm:$0xff] }
  0x54   :  { %v432_v43 = vpack.c.bf16 %v89_v41, %v88_v40  ;;  %v91_v47 = vld [vmem:[#allocation7 + $0x78] sm:$0xff]  ;;  %v411_v48 = vpack.c.bf16 %v108_v45, %v107_v44  ;;  %v75_v51 = vld [vmem:[#allocation2] sm:$0xff] }
  0x55   :  { %397 = vmatpush3.bf16.msra.mxu0 %v396_v18  ;;  %v435_v49 = vpack.c.bf16 %v91_v47, %v90_v46  ;;  %v92_v50 = vld [vmem:[#allocation5] sm:$0xff]  ;;  %v283_v52 = vld [vmem:[%s696_s4] ss:$0 sm:$0xff] }
  0x56   :  { %421 = vmatpush3.bf16.msra.mxu1 %v420_v19  ;;  %398 = vmatprep.subr.bf16.mxu0 %v571_v0  ;;  %v284_v57 = vld [vmem:[%s697_s5] ss:$0 sm:$0xff] }
  0x57   :  { %422 = vmatprep.subr.bf16.mxu1 %v571_v0 }
  0x59   :  { %400 = vmatpush3.bf16.msra.mxu0 %v399_v24 }
  0x5a   :  { %424 = vmatpush3.bf16.msra.mxu1 %v423_v25  ;;  %401 = vmatprep.subr.bf16.mxu0 %v571_v0 }
  0x5b   :  { %425 = vmatprep.subr.bf16.mxu1 %v571_v0 }
  0x5d   :  { %403 = vmatpush3.bf16.msra.mxu0 %v402_v30 }
  0x5e   :  { %427 = vmatpush3.bf16.msra.mxu1 %v426_v31  ;;  %404 = vmatprep.subr.bf16.mxu0 %v571_v0 }
  0x5f   :  { %428 = vmatprep.subr.bf16.mxu1 %v571_v0 }
  0x61   :  { %406 = vmatpush3.bf16.msra.mxu0 %v405_v36 }
  0x62   :  { %430 = vmatpush3.bf16.msra.mxu1 %v429_v37  ;;  %407 = vmatprep.subr.bf16.mxu0 %v571_v0 }
  0x63   :  { %431 = vmatprep.subr.bf16.mxu1 %v571_v0 }
  0x65   :  { %409 = vmatpush3.bf16.msra.mxu0 %v408_v42 }
  0x66   :  { %433 = vmatpush3.bf16.msra.mxu1 %v432_v43  ;;  %410 = vmatprep.subr.bf16.mxu0 %v571_v0 }
  0x67   :  { %434 = vmatprep.subr.bf16.mxu1 %v571_v0 }
  0x69   :  { %412 = vmatpush3.bf16.msra.mxu0 %v411_v48 }
  0x6a   :  { %436 = vmatpush3.bf16.msra.mxu1 %v435_v49 }
  0x6c   :  { %352 = vmatmul.mubr.f32.vlgmr.msra.gmra.mrb[0].mxu0 %v92_v50 }
  0x6d   :  { %387 = vmatmul.mubr.f32.vlgmr.msra.gmra.mrb[0].mxu1 %v75_v51 }
 0x13f   :  { %v175_v53 = vpop.f32.mrb[0].mxu0 }
 0x140   :  { %v186_v54 = vmul.f32 %v283_v52, %v175_v53  ;;  %v353_v55 = vpop.f32.mrb[1].mxu0  ;;  %v253_v56 = vpop.f32.mrb[0].mxu1 }
 0x141   :  { %v388_v58 = vpop.f32.mrb[1].mxu1 }
 0x142   :  { %v254_v59 = vadd.f32 %v253_v56, %v186_v54 }
 0x144   :  { %v264_v60 = vadd.f32 %v284_v57, %v254_v59 }
 0x146   :  { %265 = vst [vmem:[#allocation10] sm:$0xff] %v264_v60 }
 0x147   :  { %546 = shalt.err (!%p543_p8)
}
 0x148   :  { %s547_s27 = scalar_lea.hbm %s698_s6, 128 }
 0x149   :  { %p548_p9 = scmp.ne.s32.totalorder %s698_s6, %s547_s27  ;;  %p551_p10 = scmp.lt.u32.totalorder %s547_s27, %s698_s6 }
 0x14b   :  { %p553_p11 = pnand %p551_p10, %p548_p9 }
 0x14d   :  { %556 = shalt.err (!%p553_p11)
}
 0x14e   :  { %275 = dma.vmem_to_hbm [thread:$0]  %s273_s23, 128, %s698_s6, [#allocation4]  }
 0x14f   :  { %563 = dma.done.wait [#allocation4], 128  }
 0x150   :  { %564 = vsyncadd [#allocation4], 4294967168 }
 0x151   :  { %279 = vsyncpa [#allocation3], 1 }
 0x152   :  { %280 = vsyncpa [#allocation6], 1 }
 0x153   :  { %281 = vsyncpa [#allocation9], 1 }
 0x154   :  { %282 = vsyncpa [#allocation4], 1 }

</bundles_post_ra>
